<compile_context>
chip_gen: v7x
topology: tpu7x:2x2x1
jax: 0.10.0
libtpu: 0.0.40
codegen_flags: <defaults>
</compile_context>

<pallas_src>
import jax
import jax.numpy as jnp
from jax.experimental import pallas as pl
from jax.experimental.pallas import tpu as pltpu

# TODO(synk): num_actuators comes from a MuJoCo model (model.nu) that cannot be loaded
# here; use a deterministic synthetic value so the layer dims are 8 -> 16 -> 32.
NUM_ACTUATORS = 32
D_IN = NUM_ACTUATORS // 4    # 8
D_HID = NUM_ACTUATORS // 2   # 16
D_OUT = NUM_ACTUATORS        # 32

PACK = 4                     # batch rows packed per lane row -> output last dim 4*32 = 128
TILE_P_DEFAULT = 512         # packed rows per grid step (= 2048 batch rows); ~0.7 MB VMEM/step


def muscle_decoder_kernel(x_ref, w1_ref, b1_ref, w2_ref, b2_ref, o_ref):
    # x_ref:  (TILE_P, PACK*D_IN)            = (TILE_P, 32)   streamed
    # w1_ref: (PACK*D_IN,  PACK*D_HID) bd    = (32, 64)       resident
    # w2_ref: (PACK*D_HID, PACK*D_OUT) bd    = (64, 128)      resident
    # o_ref:  (TILE_P, PACK*D_OUT)           = (TILE_P, 128)  lane-dense store
    x = x_ref[...]
    h = jnp.dot(x, w1_ref[...], preferred_element_type=jnp.float32)
    h = jnp.maximum(h + b1_ref[...], 0.0)                       # bias + ReLU on the VPU
    o = jnp.dot(h, w2_ref[...], preferred_element_type=jnp.float32)
    o_ref[...] = (o + b2_ref[...]).astype(o_ref.dtype)


def muscle_decoder(x, w1, b1, w2, b2, *, pack=PACK, tile_p=TILE_P_DEFAULT):
    """x: (B, D_IN) f32. w1: (D_IN, D_HID), b1: (D_HID,), w2: (D_HID, D_OUT), b2: (D_OUT,)."""
    B, d_in = x.shape
    d_hid = w1.shape[1]
    d_out = w2.shape[1]
    pdi, pdh, pdo = pack * d_in, pack * d_hid, pack * d_out

    # Packed-row count; tile rounded to a multiple of 8 sublanes and clamped to the problem.
    p_rows = pl.cdiv(B, pack)
    tile_p = max(8, min(tile_p, ((p_rows + 7) // 8) * 8))
    p_pad = pl.cdiv(p_rows, tile_p) * tile_p
    b_pad = p_pad * pack
    if b_pad != B:
        x = jnp.pad(x, ((0, b_pad - B), (0, 0)))
    x_packed = x.reshape(p_pad, pdi)                       # 4 batch rows per lane row

    # Block-diagonal weights / tiled biases keep the packed rows independent.
    eye = jnp.eye(pack, dtype=w1.dtype)
    w1_bd = jnp.kron(eye, w1)                              # (32, 64)
    w2_bd = jnp.kron(eye, w2)                              # (64, 128)
    b1_t = jnp.tile(b1, pack).reshape(1, pdh)              # (1, 64)
    b2_t = jnp.tile(b2, pack).reshape(1, pdo)              # (1, 128)

    out_packed = pl.pallas_call(
        muscle_decoder_kernel,
        out_shape=jax.ShapeDtypeStruct((p_pad, pdo), jnp.float32),
        grid=(p_pad // tile_p,),
        in_specs=[
            pl.BlockSpec((tile_p, pdi), lambda i: (i, 0)),   # streamed activations
            pl.BlockSpec((pdi, pdh), lambda i: (0, 0)),      # VMEM-resident weights
            pl.BlockSpec((1, pdh), lambda i: (0, 0)),        # resident bias 1
            pl.BlockSpec((pdh, pdo), lambda i: (0, 0)),      # resident weights 2
            pl.BlockSpec((1, pdo), lambda i: (0, 0)),        # resident bias 2
        ],
        out_specs=pl.BlockSpec((tile_p, pdo), lambda i: (i, 0)),
        compiler_params=pltpu.CompilerParams(
            dimension_semantics=("parallel",)),              # uses 2nd TensorCore on v7x
    )(x_packed, w1_bd, b1_t, w2_bd, b2_t)

    # Undo the packing (pure row-major reshape) and drop the batch padding.
    return out_packed.reshape(b_pad, d_out)[:B]


def init_params(key):
    # PyTorch nn.Linear-style U(-1/sqrt(fan_in), 1/sqrt(fan_in)); weights stored (in, out).
    k1, k2, k3, k4 = jax.random.split(key, 4)
    lim1 = 1.0 / jnp.sqrt(jnp.float32(D_IN))
    lim2 = 1.0 / jnp.sqrt(jnp.float32(D_HID))
    w1 = jax.random.uniform(k1, (D_IN, D_HID), jnp.float32, -lim1, lim1)
    b1 = jax.random.uniform(k2, (D_HID,), jnp.float32, -lim1, lim1)
    w2 = jax.random.uniform(k3, (D_HID, D_OUT), jnp.float32, -lim2, lim2)
    b2 = jax.random.uniform(k4, (D_OUT,), jnp.float32, -lim2, lim2)
    return w1, b1, w2, b2


def reference(x, w1, b1, w2, b2):
    h = jnp.maximum(x @ w1 + b1, 0.0)
    return h @ w2 + b2


if __name__ == "__main__":
    key = jax.random.PRNGKey(0)
    kx, kp = jax.random.split(key)
    BATCH = 1000   # non-multiple of the tile/pack to exercise the padding path
    x = jax.random.normal(kx, (BATCH, D_IN), jnp.float32)
    w1, b1, w2, b2 = init_params(kp)

    out = jax.block_until_ready(muscle_decoder(x, w1, b1, w2, b2))
    ref = jax.block_until_ready(reference(x, w1, b1, w2, b2))

    assert out.shape == (BATCH, D_OUT)
    assert jnp.allclose(out, ref, atol=1e-5, rtol=1e-5), "mismatch vs reference"
    print("KERNEL_OK")
</pallas_src>

<mosaic_0001>
module attributes {stable_mosaic.version = 11 : i64} {
  func.func @muscle_decoder_kernel(%arg0: i32, %arg1: memref<256x32xf32, #tpu.memory_space<vmem>>, %arg2: memref<32x64xf32, #tpu.memory_space<vmem>>, %arg3: memref<1x64xf32, #tpu.memory_space<vmem>>, %arg4: memref<64x128xf32, #tpu.memory_space<vmem>>, %arg5: memref<1x128xf32, #tpu.memory_space<vmem>>, %arg6: memref<256x128xf32, #tpu.memory_space<vmem>>) attributes {dimension_semantics = [#tpu.dimension_semantics<parallel>], iteration_bounds = array<i64: 1>, scalar_prefetch = 0 : i64, scratch_operands = 0 : i64, tpu.core_type = #tpu.core_type<tc>, window_params = [{transform_indices = @transform_0, window_bounds = array<i64: 256, 32>}, {pipeline_mode = #tpu.pipeline_mode<synchronous>, transform_indices = @transform_1, window_bounds = array<i64: 32, 64>}, {pipeline_mode = #tpu.pipeline_mode<synchronous>, transform_indices = @transform_2, window_bounds = array<i64: 1, 64>}, {pipeline_mode = #tpu.pipeline_mode<synchronous>, transform_indices = @transform_3, window_bounds = array<i64: 64, 128>}, {pipeline_mode = #tpu.pipeline_mode<synchronous>, transform_indices = @transform_4, window_bounds = array<i64: 1, 128>}, {transform_indices = @transform_5, window_bounds = array<i64: 256, 128>}]} {
    %c0 = arith.constant 0 : index
    %c0_0 = arith.constant 0 : index
    %0 = vector.load %arg1[%c0, %c0_0] : memref<256x32xf32, #tpu.memory_space<vmem>>, vector<256x32xf32>
    %c0_1 = arith.constant 0 : index
    %c0_2 = arith.constant 0 : index
    %1 = vector.load %arg2[%c0_1, %c0_2] : memref<32x64xf32, #tpu.memory_space<vmem>>, vector<32x64xf32>
    %cst = arith.constant dense<0.000000e+00> : vector<256x64xf32>
    %2 = tpu.matmul %0, %1, %cst {dimension_numbers = #tpu.dot_dimension_numbers<[1], [0], [0], [1], [0, 0, 1, 1], [], []>} : vector<256x32xf32>, vector<32x64xf32>, vector<256x64xf32> -> vector<256x64xf32>
    %c0_3 = arith.constant 0 : index
    %c0_4 = arith.constant 0 : index
    %3 = vector.load %arg3[%c0_3, %c0_4] : memref<1x64xf32, #tpu.memory_space<vmem>>, vector<1x64xf32>
    %4 = vector.broadcast %3 : vector<1x64xf32> to vector<256x64xf32>
    %5 = arith.addf %2, %4 : vector<256x64xf32>
    %cst_5 = arith.constant 0.000000e+00 : f32
    %6 = vector.broadcast %cst_5 : f32 to vector<256x64xf32>
    %7 = arith.maximumf %5, %6 : vector<256x64xf32>
    %c0_6 = arith.constant 0 : index
    %c0_7 = arith.constant 0 : index
    %8 = vector.load %arg4[%c0_6, %c0_7] : memref<64x128xf32, #tpu.memory_space<vmem>>, vector<64x128xf32>
    %cst_8 = arith.constant dense<0.000000e+00> : vector<256x128xf32>
    %9 = tpu.matmul %7, %8, %cst_8 {dimension_numbers = #tpu.dot_dimension_numbers<[1], [0], [0], [1], [0, 0, 1, 1], [], []>} : vector<256x64xf32>, vector<64x128xf32>, vector<256x128xf32> -> vector<256x128xf32>
    %c0_9 = arith.constant 0 : index
    %c0_10 = arith.constant 0 : index
    %10 = vector.load %arg5[%c0_9, %c0_10] : memref<1x128xf32, #tpu.memory_space<vmem>>, vector<1x128xf32>
    %11 = vector.broadcast %10 : vector<1x128xf32> to vector<256x128xf32>
    %12 = arith.addf %9, %11 : vector<256x128xf32>
    %c0_11 = arith.constant 0 : index
    %c0_12 = arith.constant 0 : index
    %13 = vector.load %arg6[%c0_11, %c0_12] : memref<256x128xf32, #tpu.memory_space<vmem>>, vector<256x128xf32>
    tpu.vector_store %arg6[%c0_11, %c0_12], %12 {strides = array<i32>} : memref<256x128xf32, #tpu.memory_space<vmem>>, vector<256x128xf32>,
    return
  }
  func.func @transform_0(%arg0: i32) -> (i32, i32) {
    %c0_i32 = arith.constant 0 : i32
    %c0_i32_0 = arith.constant 0 : i32
    return %arg0, %c0_i32 : i32, i32
  }
  func.func @transform_1(%arg0: i32) -> (i32, i32) {
    %c0_i32 = arith.constant 0 : i32
    %c0_i32_0 = arith.constant 0 : i32
    %c0_i32_1 = arith.constant 0 : i32
    return %c0_i32, %c0_i32_0 : i32, i32
  }
  func.func @transform_2(%arg0: i32) -> (i32, i32) {
    %c0_i32 = arith.constant 0 : i32
    %c0_i32_0 = arith.constant 0 : i32
    %c0_i32_1 = arith.constant 0 : i32
    return %c0_i32, %c0_i32_0 : i32, i32
  }
  func.func @transform_3(%arg0: i32) -> (i32, i32) {
    %c0_i32 = arith.constant 0 : i32
    %c0_i32_0 = arith.constant 0 : i32
    %c0_i32_1 = arith.constant 0 : i32
    return %c0_i32, %c0_i32_0 : i32, i32
  }
  func.func @transform_4(%arg0: i32) -> (i32, i32) {
    %c0_i32 = arith.constant 0 : i32
    %c0_i32_0 = arith.constant 0 : i32
    %c0_i32_1 = arith.constant 0 : i32
    return %c0_i32, %c0_i32_0 : i32, i32
  }
  func.func @transform_5(%arg0: i32) -> (i32, i32) {
    %c0_i32 = arith.constant 0 : i32
    %c0_i32_0 = arith.constant 0 : i32
    return %arg0, %c0_i32 : i32, i32
  }
}

</mosaic_0001>

<bundles_post_ra>
// kernel: tpu_custom_call.1
= control target key start
LH: loop header
LB: loop body
LE: loop exit
PB: predicated region body
PF: predicated region fallthrough
CT: control target
= control target key end

     0   :  { %vm64_vm0 = vcmask 261120   ;;  %s1439_s0 = inlined_call_operand.vmem [shape: f32[256,32], index: 0, kind: input, shape index: {}]   ;;  %s1440_s1 = inlined_call_operand.vmem [shape: f32[32,64], index: 1, kind: input, shape index: {}]   ;;  %s1441_s2 = inlined_call_operand.vmem [shape: f32[1,64], index: 2, kind: input, shape index: {}]   ;;  %s1442_s3 = inlined_call_operand.vmem [shape: f32[64,128], index: 3, kind: input, shape index: {}]   ;;  %s1443_s4 = inlined_call_operand.vmem [shape: f32[1,128], index: 4, kind: input, shape index: {}]   ;;  %s1444_s5 = inlined_call_operand.hbm [shape: f32[256,128], index: 5, kind: output, shape index: {}]  }
   0x1   :  { %v53_v0 = vld [vmem:[%s1440_s1] sm:$0xff]  ;;  %v54_v1 = vld [vmem:[%s1440_s1 + $0x8] sm:$0xff]  ;;  %v55_v2 = vld [vmem:[%s1440_s1 + $0x10] sm:$0xff] }
   0x2   :  { %v1065_v3 = vpack.c.bf16 %v54_v1, %v53_v0  ;;  %v56_v4 = vld [vmem:[%s1440_s1 + $0x18] sm:$0xff]  ;;  %v21_v5 = vld [vmem:[%s1439_s0] sm:$0xff]  ;;  %v22_v7 = vld [vmem:[%s1439_s0 + $0x8] sm:$0xff] }
   0x3   :  { %v1069_v6 = vpack.c.bf16 %v56_v4, %v55_v2  ;;  %953 = vmatprep.mubr.msk.f32.mxu0 %vm64_vm0, %v21_v5  ;;  %v23_v8 = vld [vmem:[%s1439_s0 + $0x10] sm:$0xff]  ;;  %v24_v9 = vld [vmem:[%s1439_s0 + $0x18] sm:$0xff]  ;;  %v418_v10 = vld [vmem:[%s1442_s3] sm:$0xff] }
   0x4   :  { %1066 = vmatprep.subr.bf16.mxu0 %v1065_v3  ;;  %v419_v11 = vld [vmem:[%s1442_s3 + $0x8] sm:$0xff]  ;;  %v420_v12 = vld [vmem:[%s1442_s3 + $0x10] sm:$0xff]  ;;  %v25_v13 = vld [vmem:[%s1439_s0 + $0x20] sm:$0xff] }
   0x5   :  { %1068 = vmatpush3.bf16.msra.mxu0 %v1065_v3  ;;  %v1073_v14 = vpack.c.bf16 %v419_v11, %v418_v10  ;;  %v421_v15 = vld [vmem:[%s1442_s3 + $0x18] sm:$0xff]  ;;  %v422_v17 = vld [vmem:[%s1442_s3 + $0x20] sm:$0xff]  ;;  %v423_v18 = vld [vmem:[%s1442_s3 + $0x28] sm:$0xff] }
   0x6   :  { %1070 = vmatprep.subr.bf16.mxu0 %v1069_v6  ;;  %v1077_v16 = vpack.c.bf16 %v421_v15, %v420_v12 }
   0x9   :  { %1072 = vmatpush3.bf16.msra.mxu0 %v1069_v6 }
   0xc   :  { %954 = vmatmul.mubr.msk.f32.vlgmr.msra.gmra.mrb[0].mxu0 %vm64_vm0, %v22_v7 }
   0xd   :  { %956 = vmatprep.mubr.msk.f32.mxu0 %vm64_vm0, %v23_v8 }
   0xe   :  { %10 = vsyncpa [#allocation3], 0  ;;  %1074 = vmatprep.subr.bf16.mxu0 %v1073_v14  ;;  %v26_v19 = vld [vmem:[%s1439_s0 + $0x28] sm:$0xff]  ;;  %v27_v20 = vld [vmem:[%s1439_s0 + $0x30] sm:$0xff]  ;;  %1089 = vmatprep.subr.bf16.mxu1 %v1073_v14  ;;  %v1081_v21 = vpack.c.bf16 %v423_v18, %v422_v17  ;;  %vm433_vm1 = vcmask 523264  }
   0xf   :  { %1076 = vmatpush3.bf16.msra.mxu0 %v1073_v14  ;;  %1093 = vmatpush3.bf16.msra.mxu1 %v1073_v14  ;;  %v28_v22 = vld [vmem:[%s1439_s0 + $0x38] sm:$0xff]  ;;  %v29_v23 = vld [vmem:[%s1439_s0 + $0x40] sm:$0xff]  ;;  %v30_v24 = vld [vmem:[%s1439_s0 + $0x48] sm:$0xff] }
  0x10   :  { %957 = vmatmul.mubr.msk.f32.gmra.mrb[2].mxu0 %vm64_vm0, %v24_v9  ;;  %1078 = vmatprep.subr.bf16.mxu0 %v1077_v16  ;;  %v31_v25 = vld [vmem:[%s1439_s0 + $0x50] sm:$0xff]  ;;  %v32_v26 = vld [vmem:[%s1439_s0 + $0x58] sm:$0xff]  ;;  %v33_v27 = vld [vmem:[%s1439_s0 + $0x60] sm:$0xff] }
  0x11   :  { %959 = vmatprep.mubr.msk.f32.mxu0 %vm64_vm0, %v25_v13  ;;  %1090 = vmatprep.subr.bf16.mxu1 %v1077_v16  ;;  %v34_v28 = vld [vmem:[%s1439_s0 + $0x68] sm:$0xff]  ;;  %v35_v29 = vld [vmem:[%s1439_s0 + $0x70] sm:$0xff]  ;;  %v36_v30 = vld [vmem:[%s1439_s0 + $0x78] sm:$0xff] }
  0x12   :  { %v37_v31 = vld [vmem:[%s1439_s0 + $0x80] sm:$0xff]  ;;  %v38_v32 = vld [vmem:[%s1439_s0 + $0x88] sm:$0xff]  ;;  %v39_v33 = vld [vmem:[%s1439_s0 + $0x90] sm:$0xff] }
  0x13   :  { %1080 = vmatpush3.bf16.msra.mxu0 %v1077_v16  ;;  %1094 = vmatpush3.bf16.msra.mxu1 %v1077_v16  ;;  %v40_v34 = vld [vmem:[%s1439_s0 + $0x98] sm:$0xff]  ;;  %v41_v35 = vld [vmem:[%s1439_s0 + $0xa0] sm:$0xff]  ;;  %v42_v36 = vld [vmem:[%s1439_s0 + $0xa8] sm:$0xff] }
  0x14   :  { %960 = vmatmul.mubr.msk.f32.gmra.mrb[4].mxu0 %vm64_vm0, %v26_v19  ;;  %1082 = vmatprep.subr.bf16.mxu0 %v1081_v21  ;;  %v43_v37 = vld [vmem:[%s1439_s0 + $0xb0] sm:$0xff]  ;;  %v44_v38 = vld [vmem:[%s1439_s0 + $0xb8] sm:$0xff]  ;;  %v45_v39 = vld [vmem:[%s1439_s0 + $0xc0] sm:$0xff] }
  0x15   :  { %962 = vmatprep.mubr.msk.f32.mxu0 %vm64_vm0, %v27_v20  ;;  %1091 = vmatprep.subr.bf16.mxu1 %v1081_v21  ;;  %v46_v40 = vld [vmem:[%s1439_s0 + $0xc8] sm:$0xff]  ;;  %v47_v41 = vld [vmem:[%s1439_s0 + $0xd0] sm:$0xff]  ;;  %v48_v42 = vld [vmem:[%s1439_s0 + $0xd8] sm:$0xff] }
  0x16   :  { %v49_v43 = vld [vmem:[%s1439_s0 + $0xe0] sm:$0xff]  ;;  %v50_v44 = vld [vmem:[%s1439_s0 + $0xe8] sm:$0xff]  ;;  %v51_v45 = vld [vmem:[%s1439_s0 + $0xf0] sm:$0xff] }
  0x17   :  { %1084 = vmatpush3.bf16.msra.mxu0 %v1081_v21  ;;  %1095 = vmatpush3.bf16.msra.mxu1 %v1081_v21  ;;  %v52_v46 = vld [vmem:[%s1439_s0 + $0xf8] sm:$0xff]  ;;  %v424_v47 = vld [vmem:[%s1442_s3 + $0x30] sm:$0xff]  ;;  %v1324_v50 = vld [vmem:[%s1441_s2] ss:$0 sm:$0xff] }
  0x18   :  { %963 = vmatmul.mubr.msk.f32.gmra.mrb[6].mxu0 %vm64_vm0, %v28_v22  ;;  %v425_v48 = vld [vmem:[%s1442_s3 + $0x38] sm:$0xff]  ;;  %s1124_s3 = smov [#allocation2]  }
  0x19   :  { %965 = vmatprep.mubr.msk.f32.mxu0 %vm64_vm0, %v29_v23  ;;  %v1085_v49 = vpack.c.bf16 %v425_v48, %v424_v47 }
  0x1b   :  { %1086 = vmatprep.subr.bf16.mxu0 %v1085_v49  ;;  %1092 = vmatprep.subr.bf16.mxu1 %v1085_v49 }
  0x1c   :  { %966 = vmatmul.mubr.msk.f32.gmra.mrb[8].mxu0 %vm64_vm0, %v30_v24  ;;  %1096 = vmatpush3.bf16.msra.mxu1 %v1085_v49 }
  0x1d   :  { %968 = vmatprep.mubr.msk.f32.mxu0 %vm64_vm0, %v31_v25  ;;  %1088 = vmatpush3.bf16.msra.mxu0 %v1085_v49 }
  0x20   :  { %969 = vmatmul.mubr.msk.f32.gmra.mrb[10].mxu0 %vm64_vm0, %v32_v26 }
  0x21   :  { %971 = vmatprep.mubr.msk.f32.mxu0 %vm64_vm0, %v33_v27 }
  0x24   :  { %972 = vmatmul.mubr.msk.f32.gmra.mrb[12].mxu0 %vm64_vm0, %v34_v28 }
  0x25   :  { %974 = vmatprep.mubr.msk.f32.mxu0 %vm64_vm0, %v35_v29 }
  0x28   :  { %975 = vmatmul.mubr.msk.f32.gmra.mrb[14].mxu0 %vm64_vm0, %v36_v30 }
  0x29   :  { %977 = vmatprep.mubr.msk.f32.mxu0 %vm64_vm0, %v37_v31 }
  0x2c   :  { %978 = vmatmul.mubr.msk.f32.gmra.mrb[16].mxu0 %vm64_vm0, %v38_v32 }
  0x2d   :  { %980 = vmatprep.mubr.msk.f32.mxu0 %vm64_vm0, %v39_v33 }
  0x30   :  { %981 = vmatmul.mubr.msk.f32.gmra.mrb[18].mxu0 %vm64_vm0, %v40_v34 }
  0x31   :  { %983 = vmatprep.mubr.msk.f32.mxu0 %vm64_vm0, %v41_v35 }
  0x34   :  { %984 = vmatmul.mubr.msk.f32.gmra.mrb[20].mxu0 %vm64_vm0, %v42_v36 }
  0x35   :  { %986 = vmatprep.mubr.msk.f32.mxu0 %vm64_vm0, %v43_v37 }
  0x38   :  { %987 = vmatmul.mubr.msk.f32.gmra.mrb[22].mxu0 %vm64_vm0, %v44_v38 }
  0x39   :  { %989 = vmatprep.mubr.msk.f32.mxu0 %vm64_vm0, %v45_v39 }
  0x3c   :  { %990 = vmatmul.mubr.msk.f32.gmra.mrb[24].mxu0 %vm64_vm0, %v46_v40 }
  0x3d   :  { %992 = vmatprep.mubr.msk.f32.mxu0 %vm64_vm0, %v47_v41 }
  0x40   :  { %993 = vmatmul.mubr.msk.f32.gmra.mrb[26].mxu0 %vm64_vm0, %v48_v42 }
  0x41   :  { %995 = vmatprep.mubr.msk.f32.mxu0 %vm64_vm0, %v49_v43 }
  0x44   :  { %996 = vmatmul.mubr.msk.f32.gmra.mrb[28].mxu0 %vm64_vm0, %v50_v44 }
  0x45   :  { %998 = vmatprep.mubr.msk.f32.mxu0 %vm64_vm0, %v51_v45 }
  0x48   :  { %999 = vmatmul.mubr.msk.f32.gmra.mrb[30].mxu0 %vm64_vm0, %v52_v46 }
  0xdf   :  { %v955_v51 = vpop.f32.mrb[0].mxu0 }
  0xe0   :  { %v233_v52 = vadd.f32 %v955_v51, %v1324_v50  ;;  %v227_v53 = vpop.f32.mrb[1].mxu0 }
  0xe1   :  { %v228_v54 = vadd.f32 %v1324_v50, %v227_v53 }
  0xe2   :  { %v387_v57 = vmax.f32 %v233_v52, 0.0 }
  0xe3   :  { %v386_v55 = vmax.f32 %v228_v54, 0.0  ;;  %v958_v56 = vpop.f32.mrb[2].mxu0 }
  0xe4   :  { %v243_v58 = vadd.f32 %v958_v56, %v1324_v50  ;;  %v237_v59 = vpop.f32.mrb[3].mxu0 }
  0xe5   :  { %v238_v60 = vadd.f32 %v1324_v50, %v237_v59  ;;  %1017 = vmatprep.mubr.msk.f32.mxu0 %vm433_vm1, %v386_v55 }
  0xe6   :  { %1018 = vmatmul.mubr.msk.f32.vlgmr.msra.gmra.mrb[32].mxu0 %vm433_vm1, %v387_v57  ;;  %v389_v63 = vmax.f32 %v243_v58, 0.0 }
  0xe7   :  { %v388_v61 = vmax.f32 %v238_v60, 0.0  ;;  %v961_v62 = vpop.f32.mrb[4].mxu0 }
  0xe8   :  { %v253_v0 = vadd.f32 %v961_v62, %v1324_v50  ;;  %v247_v1 = vpop.f32.mrb[5].mxu0 }
  0xe9   :  { %v248_v2 = vadd.f32 %v1324_v50, %v247_v1  ;;  %1020 = vmatprep.mubr.msk.f32.mxu1 %vm433_vm1, %v388_v61 }
  0xea   :  { %1021 = vmatmul.mubr.msk.f32.vlgmr.msra.gmra.mrb[0].mxu1 %vm433_vm1, %v389_v63  ;;  %v391_v5 = vmax.f32 %v253_v0, 0.0 }
  0xeb   :  { %v390_v3 = vmax.f32 %v248_v2, 0.0  ;;  %v964_v4 = vpop.f32.mrb[6].mxu0 }
  0xec   :  { %v263_v6 = vadd.f32 %v964_v4, %v1324_v50  ;;  %v257_v7 = vpop.f32.mrb[7].mxu0 }
  0xed   :  { %v258_v8 = vadd.f32 %v1324_v50, %v257_v7  ;;  %1023 = vmatprep.mubr.msk.f32.mxu1 %vm433_vm1, %v390_v3 }
  0xee   :  { %1024 = vmatmul.mubr.msk.f32.gmra.mrb[2].mxu1 %vm433_vm1, %v391_v5  ;;  %v393_v11 = vmax.f32 %v263_v6, 0.0 }
  0xef   :  { %v392_v9 = vmax.f32 %v258_v8, 0.0  ;;  %v967_v10 = vpop.f32.mrb[8].mxu0 }
  0xf0   :  { %v273_v12 = vadd.f32 %v967_v10, %v1324_v50  ;;  %v267_v13 = vpop.f32.mrb[9].mxu0 }
  0xf1   :  { %v268_v14 = vadd.f32 %v1324_v50, %v267_v13  ;;  %1026 = vmatprep.mubr.msk.f32.mxu1 %vm433_vm1, %v392_v9 }
  0xf2   :  { %1027 = vmatmul.mubr.msk.f32.gmra.mrb[4].mxu1 %vm433_vm1, %v393_v11  ;;  %v395_v17 = vmax.f32 %v273_v12, 0.0 }
  0xf3   :  { %v394_v15 = vmax.f32 %v268_v14, 0.0  ;;  %v970_v16 = vpop.f32.mrb[10].mxu0 }
  0xf4   :  { %v283_v18 = vadd.f32 %v970_v16, %v1324_v50  ;;  %v277_v19 = vpop.f32.mrb[11].mxu0 }
  0xf5   :  { %v278_v20 = vadd.f32 %v1324_v50, %v277_v19  ;;  %1029 = vmatprep.mubr.msk.f32.mxu1 %vm433_vm1, %v394_v15 }
  0xf6   :  { %1030 = vmatmul.mubr.msk.f32.gmra.mrb[6].mxu1 %vm433_vm1, %v395_v17  ;;  %v397_v23 = vmax.f32 %v283_v18, 0.0 }
  0xf7   :  { %v396_v21 = vmax.f32 %v278_v20, 0.0  ;;  %v973_v22 = vpop.f32.mrb[12].mxu0  ;;  %v1393_v20 = vld [vmem:[%s1443_s4] ss:$0 sm:$0xff]  ;;  %s792_s4 = sshll.u32 %s1124_s3, 4  ;;  %s793_s4 = int_to_ptr.vmem [resolvable:$true] %s792_s4 }
  0xf8   :  { %v293_v24 = vadd.f32 %v973_v22, %v1324_v50  ;;  %v287_v25 = vpop.f32.mrb[13].mxu0  ;;  %s1100_s30 = scalar_lea.vmem %s793_s4, 4096  ;;  %p1105_p1 = scmp.lt.s32.totalorder %s793_s4, %s793_s4 }
  0xf9   :  { %v288_v26 = vadd.f32 %v1324_v50, %v287_v25  ;;  %1032 = vmatprep.mubr.msk.f32.mxu1 %vm433_vm1, %v396_v21  ;;  %p1101_p0 = scmp.ne.s32.totalorder %s793_s4, %s1100_s30  ;;  %p1106_p2 = scmp.lt.s32.totalorder %s1100_s30, %s1100_s30 }
  0xfa   :  { %1033 = vmatmul.mubr.msk.f32.gmra.mrb[8].mxu1 %vm433_vm1, %v397_v23  ;;  %v399_v29 = vmax.f32 %v293_v24, 0.0 }
  0xfb   :  { %v398_v27 = vmax.f32 %v288_v26, 0.0  ;;  %v976_v28 = vpop.f32.mrb[14].mxu0  ;;  %p1107_p3 = por %p1106_p2, %p1105_p1 }
  0xfc   :  { %v303_v30 = vadd.f32 %v976_v28, %v1324_v50  ;;  %v297_v31 = vpop.f32.mrb[15].mxu0 }
  0xfd   :  { %v298_v32 = vadd.f32 %v1324_v50, %v297_v31  ;;  %1035 = vmatprep.mubr.msk.f32.mxu1 %vm433_vm1, %v398_v27  ;;  %p1108_p4 = pnand %p1107_p3, %p1101_p0 }
  0xfe   :  { %1036 = vmatmul.mubr.msk.f32.gmra.mrb[10].mxu1 %vm433_vm1, %v399_v29  ;;  %v401_v35 = vmax.f32 %v303_v30, 0.0 }
  0xff   :  { %v400_v33 = vmax.f32 %v298_v32, 0.0  ;;  %v979_v34 = vpop.f32.mrb[16].mxu0 }
 0x100   :  { %v313_v36 = vadd.f32 %v979_v34, %v1324_v50  ;;  %v307_v37 = vpop.f32.mrb[17].mxu0 }
 0x101   :  { %v308_v38 = vadd.f32 %v1324_v50, %v307_v37  ;;  %1038 = vmatprep.mubr.msk.f32.mxu1 %vm433_vm1, %v400_v33 }
 0x102   :  { %1039 = vmatmul.mubr.msk.f32.gmra.mrb[12].mxu1 %vm433_vm1, %v401_v35  ;;  %v403_v41 = vmax.f32 %v313_v36, 0.0 }
 0x103   :  { %v402_v39 = vmax.f32 %v308_v38, 0.0  ;;  %v982_v40 = vpop.f32.mrb[18].mxu0 }
 0x104   :  { %v323_v42 = vadd.f32 %v982_v40, %v1324_v50  ;;  %v317_v43 = vpop.f32.mrb[19].mxu0 }
 0x105   :  { %v318_v44 = vadd.f32 %v1324_v50, %v317_v43  ;;  %1041 = vmatprep.mubr.msk.f32.mxu1 %vm433_vm1, %v402_v39 }
 0x106   :  { %1042 = vmatmul.mubr.msk.f32.gmra.mrb[14].mxu1 %vm433_vm1, %v403_v41  ;;  %v405_v47 = vmax.f32 %v323_v42, 0.0 }
 0x107   :  { %v404_v45 = vmax.f32 %v318_v44, 0.0  ;;  %v985_v46 = vpop.f32.mrb[20].mxu0 }
 0x108   :  { %v333_v48 = vadd.f32 %v985_v46, %v1324_v50  ;;  %v327_v49 = vpop.f32.mrb[21].mxu0 }
 0x109   :  { %v328_v51 = vadd.f32 %v1324_v50, %v327_v49  ;;  %1044 = vmatprep.mubr.msk.f32.mxu1 %vm433_vm1, %v404_v45 }
 0x10a   :  { %1045 = vmatmul.mubr.msk.f32.gmra.mrb[16].mxu1 %vm433_vm1, %v405_v47  ;;  %v407_v54 = vmax.f32 %v333_v48, 0.0 }
 0x10b   :  { %v406_v52 = vmax.f32 %v328_v51, 0.0  ;;  %v988_v53 = vpop.f32.mrb[22].mxu0 }
 0x10c   :  { %v343_v55 = vadd.f32 %v988_v53, %v1324_v50  ;;  %v337_v56 = vpop.f32.mrb[23].mxu0 }
 0x10d   :  { %v338_v57 = vadd.f32 %v1324_v50, %v337_v56  ;;  %1047 = vmatprep.mubr.msk.f32.mxu1 %vm433_vm1, %v406_v52 }
 0x10e   :  { %1048 = vmatmul.mubr.msk.f32.gmra.mrb[18].mxu1 %vm433_vm1, %v407_v54  ;;  %v409_v60 = vmax.f32 %v343_v55, 0.0 }
 0x10f   :  { %v408_v58 = vmax.f32 %v338_v57, 0.0  ;;  %v991_v59 = vpop.f32.mrb[24].mxu0 }
 0x110   :  { %v353_v61 = vadd.f32 %v991_v59, %v1324_v50  ;;  %v347_v62 = vpop.f32.mrb[25].mxu0 }
 0x111   :  { %v348_v63 = vadd.f32 %v1324_v50, %v347_v62  ;;  %1050 = vmatprep.mubr.msk.f32.mxu1 %vm433_vm1, %v408_v58 }
 0x112   :  { %1051 = vmatmul.mubr.msk.f32.gmra.mrb[20].mxu1 %vm433_vm1, %v409_v60  ;;  %v411_v2 = vmax.f32 %v353_v61, 0.0 }
 0x113   :  { %v410_v0 = vmax.f32 %v348_v63, 0.0  ;;  %v994_v1 = vpop.f32.mrb[26].mxu0 }
 0x114   :  { %v363_v3 = vadd.f32 %v994_v1, %v1324_v50  ;;  %v357_v4 = vpop.f32.mrb[27].mxu0 }
 0x115   :  { %v358_v5 = vadd.f32 %v1324_v50, %v357_v4  ;;  %1053 = vmatprep.mubr.msk.f32.mxu1 %vm433_vm1, %v410_v0 }
 0x116   :  { %1054 = vmatmul.mubr.msk.f32.gmra.mrb[22].mxu1 %vm433_vm1, %v411_v2  ;;  %v413_v8 = vmax.f32 %v363_v3, 0.0 }
 0x117   :  { %v412_v6 = vmax.f32 %v358_v5, 0.0  ;;  %v997_v7 = vpop.f32.mrb[28].mxu0 }
 0x118   :  { %v373_v9 = vadd.f32 %v997_v7, %v1324_v50  ;;  %v367_v10 = vpop.f32.mrb[29].mxu0 }
 0x119   :  { %v368_v11 = vadd.f32 %v1324_v50, %v367_v10  ;;  %1056 = vmatprep.mubr.msk.f32.mxu1 %vm433_vm1, %v412_v6 }
 0x11a   :  { %1057 = vmatmul.mubr.msk.f32.gmra.mrb[24].mxu1 %vm433_vm1, %v413_v8  ;;  %v415_v14 = vmax.f32 %v373_v9, 0.0 }
 0x11b   :  { %v414_v12 = vmax.f32 %v368_v11, 0.0  ;;  %v1000_v13 = vpop.f32.mrb[30].mxu0 }
 0x11c   :  { %v383_v15 = vadd.f32 %v1000_v13, %v1324_v50  ;;  %v377_v16 = vpop.f32.mrb[31].mxu0 }
 0x11d   :  { %v378_v17 = vadd.f32 %v1324_v50, %v377_v16  ;;  %1059 = vmatprep.mubr.msk.f32.mxu1 %vm433_vm1, %v414_v12 }
 0x11e   :  { %1060 = vmatmul.mubr.msk.f32.gmra.mrb[26].mxu1 %vm433_vm1, %v415_v14  ;;  %v417_v19 = vmax.f32 %v383_v15, 0.0 }
 0x11f   :  { %v416_v18 = vmax.f32 %v378_v17, 0.0 }
 0x121   :  { %1062 = vmatprep.mubr.msk.f32.mxu1 %vm433_vm1, %v416_v18 }
 0x122   :  { %1063 = vmatmul.mubr.msk.f32.gmra.mrb[28].mxu1 %vm433_vm1, %v417_v19 }
 0x1b9   :  { %v1019_v21 = vpop.f32.mrb[32].mxu0 }
 0x1ba   :  { %v602_v22 = vadd.f32 %v1019_v21, %v1393_v20  ;;  %v596_v23 = vpop.f32.mrb[33].mxu0 }
 0x1bb   :  { %v597_v50 = vadd.f32 %v1393_v20, %v596_v23 }
 0x1bc   :  { %756 = vst [vmem:[#allocation2 + $0x8] sm:$0xff] %v602_v22 }
 0x1bd   :  { %755 = vst [vmem:[#allocation2] sm:$0xff] %v597_v50  ;;  %v1022_v24 = vpop.f32.mrb[0].mxu1 }
 0x1be   :  { %v612_v25 = vadd.f32 %v1022_v24, %v1393_v20  ;;  %v606_v26 = vpop.f32.mrb[1].mxu1 }
 0x1bf   :  { %v607_v27 = vadd.f32 %v1393_v20, %v606_v26 }
 0x1c0   :  { %758 = vst [vmem:[#allocation2 + $0x18] sm:$0xff] %v612_v25 }
 0x1c1   :  { %757 = vst [vmem:[#allocation2 + $0x10] sm:$0xff] %v607_v27  ;;  %v1025_v28 = vpop.f32.mrb[2].mxu1 }
 0x1c2   :  { %v622_v29 = vadd.f32 %v1025_v28, %v1393_v20  ;;  %v616_v30 = vpop.f32.mrb[3].mxu1 }
 0x1c3   :  { %v617_v31 = vadd.f32 %v1393_v20, %v616_v30 }
 0x1c4   :  { %760 = vst [vmem:[#allocation2 + $0x28] sm:$0xff] %v622_v29 }
 0x1c5   :  { %759 = vst [vmem:[#allocation2 + $0x20] sm:$0xff] %v617_v31  ;;  %v1028_v32 = vpop.f32.mrb[4].mxu1 }
 0x1c6   :  { %v632_v33 = vadd.f32 %v1028_v32, %v1393_v20  ;;  %v626_v34 = vpop.f32.mrb[5].mxu1 }
 0x1c7   :  { %v627_v35 = vadd.f32 %v1393_v20, %v626_v34 }
 0x1c8   :  { %762 = vst [vmem:[#allocation2 + $0x38] sm:$0xff] %v632_v33 }
 0x1c9   :  { %761 = vst [vmem:[#allocation2 + $0x30] sm:$0xff] %v627_v35  ;;  %v1031_v36 = vpop.f32.mrb[6].mxu1 }
 0x1ca   :  { %v642_v37 = vadd.f32 %v1031_v36, %v1393_v20  ;;  %v636_v38 = vpop.f32.mrb[7].mxu1 }
 0x1cb   :  { %v637_v39 = vadd.f32 %v1393_v20, %v636_v38 }
 0x1cc   :  { %764 = vst [vmem:[#allocation2 + $0x48] sm:$0xff] %v642_v37 }
 0x1cd   :  { %763 = vst [vmem:[#allocation2 + $0x40] sm:$0xff] %v637_v39  ;;  %v1034_v40 = vpop.f32.mrb[8].mxu1 }
 0x1ce   :  { %v652_v41 = vadd.f32 %v1034_v40, %v1393_v20  ;;  %v646_v42 = vpop.f32.mrb[9].mxu1 }
 0x1cf   :  { %v647_v43 = vadd.f32 %v1393_v20, %v646_v42 }
 0x1d0   :  { %766 = vst [vmem:[#allocation2 + $0x58] sm:$0xff] %v652_v41 }
 0x1d1   :  { %765 = vst [vmem:[#allocation2 + $0x50] sm:$0xff] %v647_v43  ;;  %v1037_v44 = vpop.f32.mrb[10].mxu1 }
 0x1d2   :  { %v662_v45 = vadd.f32 %v1037_v44, %v1393_v20  ;;  %v656_v46 = vpop.f32.mrb[11].mxu1 }
 0x1d3   :  { %v657_v47 = vadd.f32 %v1393_v20, %v656_v46 }
 0x1d4   :  { %768 = vst [vmem:[#allocation2 + $0x68] sm:$0xff] %v662_v45 }
 0x1d5   :  { %767 = vst [vmem:[#allocation2 + $0x60] sm:$0xff] %v657_v47  ;;  %v1040_v48 = vpop.f32.mrb[12].mxu1 }
 0x1d6   :  { %v672_v49 = vadd.f32 %v1040_v48, %v1393_v20  ;;  %v666_v51 = vpop.f32.mrb[13].mxu1 }
 0x1d7   :  { %v667_v52 = vadd.f32 %v1393_v20, %v666_v51 }
 0x1d8   :  { %770 = vst [vmem:[#allocation2 + $0x78] sm:$0xff] %v672_v49 }
 0x1d9   :  { %769 = vst [vmem:[#allocation2 + $0x70] sm:$0xff] %v667_v52  ;;  %v1043_v53 = vpop.f32.mrb[14].mxu1 }
 0x1da   :  { %v682_v54 = vadd.f32 %v1043_v53, %v1393_v20  ;;  %v676_v55 = vpop.f32.mrb[15].mxu1 }
 0x1db   :  { %v677_v56 = vadd.f32 %v1393_v20, %v676_v55 }
 0x1dc   :  { %772 = vst [vmem:[#allocation2 + $0x88] sm:$0xff] %v682_v54 }
 0x1dd   :  { %771 = vst [vmem:[#allocation2 + $0x80] sm:$0xff] %v677_v56  ;;  %v1046_v57 = vpop.f32.mrb[16].mxu1 }
 0x1de   :  { %v692_v58 = vadd.f32 %v1046_v57, %v1393_v20  ;;  %v686_v59 = vpop.f32.mrb[17].mxu1 }
 0x1df   :  { %v687_v60 = vadd.f32 %v1393_v20, %v686_v59 }
 0x1e0   :  { %774 = vst [vmem:[#allocation2 + $0x98] sm:$0xff] %v692_v58 }
 0x1e1   :  { %773 = vst [vmem:[#allocation2 + $0x90] sm:$0xff] %v687_v60  ;;  %v1049_v61 = vpop.f32.mrb[18].mxu1 }
 0x1e2   :  { %v702_v62 = vadd.f32 %v1049_v61, %v1393_v20  ;;  %v696_v63 = vpop.f32.mrb[19].mxu1 }
 0x1e3   :  { %v697_v0 = vadd.f32 %v1393_v20, %v696_v63 }
 0x1e4   :  { %776 = vst [vmem:[#allocation2 + $0xa8] sm:$0xff] %v702_v62 }
 0x1e5   :  { %775 = vst [vmem:[#allocation2 + $0xa0] sm:$0xff] %v697_v0  ;;  %v1052_v1 = vpop.f32.mrb[20].mxu1 }
 0x1e6   :  { %v712_v2 = vadd.f32 %v1052_v1, %v1393_v20  ;;  %v706_v3 = vpop.f32.mrb[21].mxu1 }
 0x1e7   :  { %v707_v4 = vadd.f32 %v1393_v20, %v706_v3 }
 0x1e8   :  { %778 = vst [vmem:[#allocation2 + $0xb8] sm:$0xff] %v712_v2 }
 0x1e9   :  { %777 = vst [vmem:[#allocation2 + $0xb0] sm:$0xff] %v707_v4  ;;  %v1055_v5 = vpop.f32.mrb[22].mxu1 }
 0x1ea   :  { %v722_v6 = vadd.f32 %v1055_v5, %v1393_v20  ;;  %v716_v7 = vpop.f32.mrb[23].mxu1 }
 0x1eb   :  { %v717_v8 = vadd.f32 %v1393_v20, %v716_v7 }
 0x1ec   :  { %780 = vst [vmem:[#allocation2 + $0xc8] sm:$0xff] %v722_v6 }
 0x1ed   :  { %779 = vst [vmem:[#allocation2 + $0xc0] sm:$0xff] %v717_v8  ;;  %v1058_v9 = vpop.f32.mrb[24].mxu1 }
 0x1ee   :  { %v732_v10 = vadd.f32 %v1058_v9, %v1393_v20  ;;  %v726_v11 = vpop.f32.mrb[25].mxu1 }
 0x1ef   :  { %v727_v12 = vadd.f32 %v1393_v20, %v726_v11 }
 0x1f0   :  { %782 = vst [vmem:[#allocation2 + $0xd8] sm:$0xff] %v732_v10 }
 0x1f1   :  { %781 = vst [vmem:[#allocation2 + $0xd0] sm:$0xff] %v727_v12  ;;  %v1061_v13 = vpop.f32.mrb[26].mxu1 }
 0x1f2   :  { %v742_v14 = vadd.f32 %v1061_v13, %v1393_v20  ;;  %v736_v15 = vpop.f32.mrb[27].mxu1 }
 0x1f3   :  { %v737_v16 = vadd.f32 %v1393_v20, %v736_v15 }
 0x1f4   :  { %784 = vst [vmem:[#allocation2 + $0xe8] sm:$0xff] %v742_v14 }
 0x1f5   :  { %783 = vst [vmem:[#allocation2 + $0xe0] sm:$0xff] %v737_v16  ;;  %v1064_v17 = vpop.f32.mrb[28].mxu1 }
 0x1f6   :  { %v752_v18 = vadd.f32 %v1064_v17, %v1393_v20  ;;  %v746_v19 = vpop.f32.mrb[29].mxu1 }
 0x1f7   :  { %v747_v21 = vadd.f32 %v1393_v20, %v746_v19 }
 0x1f8   :  { %786 = vst [vmem:[#allocation2 + $0xf8] sm:$0xff] %v752_v18 }
 0x1f9   :  { %785 = vst [vmem:[#allocation2 + $0xf0] sm:$0xff] %v747_v21 }
 0x1fa   :  { %1111 = shalt.err (!%p1108_p4)
}
 0x1fb   :  { %s1112_s7 = scalar_lea.hbm %s1444_s5, 4096 }
 0x1fc   :  { %p1113_p5 = scmp.ne.s32.totalorder %s1444_s5, %s1112_s7  ;;  %p1116_p6 = scmp.lt.u32.totalorder %s1112_s7, %s1444_s5 }
 0x1fe   :  { %p1118_p7 = pnand %p1116_p6, %p1113_p5 }
 0x200   :  { %1121 = shalt.err (!%p1118_p7)
}
 0x201   :  { %s1125_s12 = smov 128   ;;  %s1126_s13 = smov 8  }
 0x202   :  { %798 = dma.vmem_to_hbm [thread:$0]  %s793_s4, 4096, %s1444_s5, [#allocation3], %s1125_s12, %s1125_s12, %s1126_s13  }
 0x203   :  { %1122 = dma.done.wait [#allocation3], 4096  }
 0x204   :  { %1123 = vsyncadd [#allocation3], 4294963200 }
 0x205   :  { %802 = vsyncpa [#allocation3], 1 }

</bundles_post_ra>
